<compile_context>
chip_gen: v7x
topology: tpu7x:2x2x1
jax: 0.10.0
libtpu: 0.0.40
codegen_flags: <defaults>
</compile_context>

<pallas_src>
import functools

import numpy as np

import jax
import jax.numpy as jnp
from jax.experimental import pallas as pl
from jax.experimental.pallas import tpu as pltpu

# --- model hyperparameters (module globals in the PyTorch source) ---
d_model = 32
d_k = 8
d_v = 8
n_head = 4


def mha_kernel(x_ref, bias_ref, wqkv_ref, bqkv_ref, wo_ref, bo_ref,
               gamma_ref, beta_ref, out_ref, attn_ref, *, B, S):
    """Single invocation; all operands resident in VMEM.

    x_ref    : [3*B*S, d_model]  rows 0:BS = Q, BS:2BS = K, 2BS:3BS = V (flattened)
    bias_ref : [B*n_head, S, S]  additive mask bias (-1e9 where masked), n = b*H + h
    wqkv_ref : [d_model, 3*n_head*d_k]   (= [wq | wk | wv])
    bqkv_ref : [1, 3*n_head*d_k]
    wo_ref   : [n_head*d_v, d_model],  bo/gamma/beta : [1, d_model]
    out_ref  : [B*S, d_model]
    attn_ref : [B*S, n_head*S]   attn[b,h,q,k] stored at row b*S+q, col h*S+k
    """
    H = n_head
    BS = B * S
    HD = H * d_k

    x_all = x_ref[...]                                   # [3*BS, d_model]

    # (1) Fused Q/K/V projection: ONE MXU push [3*BS, d_model] x [d_model, 3*H*d_k].
    # Only the 3 diagonal (input, weight) blocks of the result are used; the
    # redundant flops ride along in the same push and are free at this size.
    proj = jnp.dot(x_all, wqkv_ref[...],
                   preferred_element_type=jnp.float32) + bqkv_ref[0]   # [3*BS, 3*HD]
    q_rows = proj[0:BS,        0:HD]                     # Q @ wq + bq   [BS, H*d_k]
    k_rows = proj[BS:2 * BS,   HD:2 * HD]                # K @ wk + bk
    v_rows = proj[2 * BS:3 * BS, 2 * HD:3 * HD]          # V @ wv + bv

    # (2) Head split: pure data movement (one tiny slice per (batch, head)); all
    # contractions below are single batched dot_generals.
    def to_heads(rows, d):                               # rows: [BS, H*d]
        return jnp.stack([rows[b * S:(b + 1) * S, h * d:(h + 1) * d]
                          for b in range(B) for h in range(H)], axis=0)   # [B*H, S, d]

    qh = to_heads(q_rows, d_k)
    kh = to_heads(k_rows, d_k)
    vh = to_heads(v_rows, d_v)

    # (3) Scaled dot-product attention, batched over n = (batch, head).
    scale = jnp.float32(1.0 / np.sqrt(d_k))
    scores = jnp.einsum('nqd,nkd->nqk', qh, kh,
                        preferred_element_type=jnp.float32) * scale      # [B*H, S, S]
    scores = scores + bias_ref[...]                      # additive mask bias, one add

    m = jnp.max(scores, axis=-1, keepdims=True)
    e = jnp.exp(scores - m)
    denom = jnp.sum(e, axis=-1, keepdims=True)
    # exact reciprocal keeps bit-level agreement with the f32 reference;
    # approx=True would move the op onto the EUP slot (vrcp) if tolerated.
    p = e * pl.reciprocal(denom, approx=False)           # [B*H, S, S]

    ctx = jnp.einsum('nqk,nkd->nqd', p, vh,
                     preferred_element_type=jnp.float32)                 # [B*H, S, d_v]

    # (4) Re-pack heads along lanes: [BS, H*d_v] context rows and a lane-denser
    # [BS, H*S] attention slab (wrapper un-flattens it for free).
    def from_heads(t):                                   # t: [B*H, S, d]
        return jnp.concatenate(
            [jnp.concatenate([t[b * H + h] for h in range(H)], axis=-1)
             for b in range(B)], axis=0)                 # [BS, H*d]

    ctx_rows = from_heads(ctx)                           # [BS, H*d_v]
    attn_ref[...] = from_heads(p)                        # [BS, H*S]

    # (5) Output projection + residual (on Q) + LayerNorm(d_model), eps = 1e-5.
    out = jnp.dot(ctx_rows, wo_ref[...],
                  preferred_element_type=jnp.float32) + bo_ref[0]        # [BS, d_model]
    y = out + x_all[0:BS, :]
    mean = jnp.mean(y, axis=-1, keepdims=True)
    var = jnp.mean((y - mean) * (y - mean), axis=-1, keepdims=True)
    y_norm = (y - mean) * jax.lax.rsqrt(var + 1e-5)
    out_ref[...] = y_norm * gamma_ref[0] + beta_ref[0]


def multi_head_attention(Q, K, V, attn_mask, params):
    """Q, K, V: [B, S, d_model] float32.  attn_mask: [B, S, S] bool (True = masked)."""
    B, S, _ = Q.shape

    # --- wrapper-side layout plumbing (free XLA ops, no kernel compute) ---
    # stack [Q; K; V] as flat rows so the kernel does ONE fused projection matmul
    x_rows = jnp.concatenate([Q, K, V], axis=0).reshape(3 * B * S, d_model)
    # additive mask bias, replicated per head so the kernel applies it with 1 add
    bias = jnp.where(attn_mask, jnp.float32(-1e9), jnp.float32(0.0))
    bias_bh = jnp.repeat(bias, n_head, axis=0)           # [B*n_head, S, S], n = b*H + h
    # fused projection weight / bias
    wqkv = jnp.concatenate([params["wq"], params["wk"], params["wv"]], axis=1)
    bqkv = jnp.concatenate([params["bq"], params["bk"], params["bv"]], axis=1)

    kernel = functools.partial(mha_kernel, B=B, S=S)
    vmem = pl.BlockSpec(memory_space=pltpu.MemorySpace.VMEM)

    out_rows, attn_rows = pl.pallas_call(
        kernel,
        out_shape=(
            jax.ShapeDtypeStruct((B * S, d_model), jnp.float32),
            jax.ShapeDtypeStruct((B * S, n_head * S), jnp.float32),
        ),
        in_specs=[vmem] * 8,
        out_specs=(vmem, vmem),
    )(x_rows, bias_bh, wqkv, bqkv,
      params["wo"], params["bo"], params["gamma"], params["beta"])

    out = out_rows.reshape(B, S, d_model)
    attn = attn_rows.reshape(B, S, n_head, S).transpose(0, 2, 1, 3)
    return out, attn


def init_params(key):
    # Deterministic synthetic parameters; Linear weights stored as [in, out]
    # (i.e. PyTorch nn.Linear weight transposed).  Biases / LN params as [1, dim].
    ks = jax.random.split(key, 8)
    scale = 0.05
    return {
        "wq": scale * jax.random.normal(ks[0], (d_model, d_k * n_head), jnp.float32),
        "bq": scale * jax.random.normal(ks[1], (1, d_k * n_head), jnp.float32),
        "wk": scale * jax.random.normal(ks[2], (d_model, d_k * n_head), jnp.float32),
        "bk": scale * jax.random.normal(ks[3], (1, d_k * n_head), jnp.float32),
        "wv": scale * jax.random.normal(ks[4], (d_model, d_v * n_head), jnp.float32),
        "bv": scale * jax.random.normal(ks[5], (1, d_v * n_head), jnp.float32),
        "wo": scale * jax.random.normal(ks[6], (n_head * d_v, d_model), jnp.float32),
        "bo": scale * jax.random.normal(ks[7], (1, d_model), jnp.float32),
        "gamma": jnp.ones((1, d_model), jnp.float32),
        "beta": jnp.zeros((1, d_model), jnp.float32),
    }


def reference(Q, K, V, attn_mask, p):
    """Pure-JAX reference matching the PyTorch forward."""
    B, S, _ = Q.shape
    q = (Q @ p["wq"] + p["bq"]).reshape(B, S, n_head, d_k).transpose(0, 2, 1, 3)
    k = (K @ p["wk"] + p["bk"]).reshape(B, S, n_head, d_k).transpose(0, 2, 1, 3)
    v = (V @ p["wv"] + p["bv"]).reshape(B, S, n_head, d_v).transpose(0, 2, 1, 3)
    scores = jnp.einsum("bhqd,bhkd->bhqk", q, k) / np.sqrt(d_k)
    scores = jnp.where(attn_mask[:, None, :, :], -1e9, scores)
    attn = jax.nn.softmax(scores, axis=-1)
    ctx = jnp.einsum("bhqk,bhkd->bhqd", attn, v)
    ctx = ctx.transpose(0, 2, 1, 3).reshape(B, S, n_head * d_v)
    out = ctx @ p["wo"] + p["bo"]
    y = out + Q
    mean = jnp.mean(y, axis=-1, keepdims=True)
    var = jnp.mean((y - mean) ** 2, axis=-1, keepdims=True)
    y = (y - mean) / jnp.sqrt(var + 1e-5) * p["gamma"][0] + p["beta"][0]
    return y, attn


if __name__ == "__main__":
    key = jax.random.PRNGKey(0)
    k_q, k_k, k_v, k_m, k_p = jax.random.split(key, 5)

    B, S = 2, 8
    Q = jax.random.normal(k_q, (B, S, d_model), jnp.float32)
    K = jax.random.normal(k_k, (B, S, d_model), jnp.float32)
    V = jax.random.normal(k_v, (B, S, d_model), jnp.float32)
    # pad mask: mask out the last 2 key positions for every query (True = masked)
    attn_mask = jnp.broadcast_to(jnp.arange(S) >= S - 2, (B, S, S))

    params = init_params(k_p)

    out, attn_map = multi_head_attention(Q, K, V, attn_mask, params)
    out = jax.block_until_ready(out)
    attn_map = jax.block_until_ready(attn_map)

    ref_out, ref_attn = reference(Q, K, V, attn_mask, params)
    np.testing.assert_allclose(np.asarray(out), np.asarray(ref_out), atol=1e-4, rtol=1e-4)
    np.testing.assert_allclose(np.asarray(attn_map), np.asarray(ref_attn), atol=1e-5, rtol=1e-5)

    print("KERNEL_OK")
</pallas_src>

<mosaic_0001>
module attributes {stable_mosaic.version = 11 : i64} {
  func.func @mha_kernel(%arg0: memref<48x32xf32, #tpu.memory_space<vmem>>, %arg1: memref<8x8x8xf32, #tpu.memory_space<vmem>>, %arg2: memref<32x96xf32, #tpu.memory_space<vmem>>, %arg3: memref<1x96xf32, #tpu.memory_space<vmem>>, %arg4: memref<32x32xf32, #tpu.memory_space<vmem>>, %arg5: memref<1x32xf32, #tpu.memory_space<vmem>>, %arg6: memref<1x32xf32, #tpu.memory_space<vmem>>, %arg7: memref<1x32xf32, #tpu.memory_space<vmem>>, %arg8: memref<16x32xf32, #tpu.memory_space<vmem>>, %arg9: memref<16x32xf32, #tpu.memory_space<vmem>>) attributes {dimension_semantics = [], scalar_prefetch = 0 : i64, scratch_operands = 0 : i64, tpu.core_type = #tpu.core_type<tc>} {
    %c0 = arith.constant 0 : index
    %c0_0 = arith.constant 0 : index
    %0 = vector.load %arg0[%c0, %c0_0] : memref<48x32xf32, #tpu.memory_space<vmem>>, vector<48x32xf32>
    %c0_1 = arith.constant 0 : index
    %c0_2 = arith.constant 0 : index
    %1 = vector.load %arg2[%c0_1, %c0_2] : memref<32x96xf32, #tpu.memory_space<vmem>>, vector<32x96xf32>
    %cst = arith.constant dense<0.000000e+00> : vector<48x96xf32>
    %2 = tpu.matmul %0, %1, %cst {dimension_numbers = #tpu.dot_dimension_numbers<[1], [0], [0], [1], [0, 0, 1, 1], [], []>} : vector<48x32xf32>, vector<32x96xf32>, vector<48x96xf32> -> vector<48x96xf32>
    %c0_3 = arith.constant 0 : index
    %c0_4 = arith.constant 0 : index
    %3 = vector.load %arg3[%c0_3, %c0_4] : memref<1x96xf32, #tpu.memory_space<vmem>>, vector<1x96xf32>
    %4 = vector.shape_cast %3 : vector<1x96xf32> to vector<96xf32>
    %5 = vector.shape_cast %4 : vector<96xf32> to vector<1x96xf32>
    %6 = vector.broadcast %5 : vector<1x96xf32> to vector<48x96xf32>
    %7 = arith.addf %2, %6 : vector<48x96xf32>
    %8 = vector.extract_strided_slice %7 {offsets = [0, 0], sizes = [16, 32], strides = [1, 1]} : vector<48x96xf32> to vector<16x32xf32>
    %9 = vector.extract_strided_slice %7 {offsets = [16, 32], sizes = [16, 32], strides = [1, 1]} : vector<48x96xf32> to vector<16x32xf32>
    %10 = vector.extract_strided_slice %7 {offsets = [32, 64], sizes = [16, 32], strides = [1, 1]} : vector<48x96xf32> to vector<16x32xf32>
    %11 = vector.extract_strided_slice %8 {offsets = [0, 0], sizes = [8, 8], strides = [1, 1]} : vector<16x32xf32> to vector<8x8xf32>
    %12 = vector.extract_strided_slice %8 {offsets = [0, 8], sizes = [8, 8], strides = [1, 1]} : vector<16x32xf32> to vector<8x8xf32>
    %13 = vector.extract_strided_slice %8 {offsets = [0, 16], sizes = [8, 8], strides = [1, 1]} : vector<16x32xf32> to vector<8x8xf32>
    %14 = vector.extract_strided_slice %8 {offsets = [0, 24], sizes = [8, 8], strides = [1, 1]} : vector<16x32xf32> to vector<8x8xf32>
    %15 = vector.extract_strided_slice %8 {offsets = [8, 0], sizes = [8, 8], strides = [1, 1]} : vector<16x32xf32> to vector<8x8xf32>
    %16 = vector.extract_strided_slice %8 {offsets = [8, 8], sizes = [8, 8], strides = [1, 1]} : vector<16x32xf32> to vector<8x8xf32>
    %17 = vector.extract_strided_slice %8 {offsets = [8, 16], sizes = [8, 8], strides = [1, 1]} : vector<16x32xf32> to vector<8x8xf32>
    %18 = vector.extract_strided_slice %8 {offsets = [8, 24], sizes = [8, 8], strides = [1, 1]} : vector<16x32xf32> to vector<8x8xf32>
    %19 = vector.shape_cast %11 : vector<8x8xf32> to vector<1x8x8xf32>
    %20 = vector.shape_cast %12 : vector<8x8xf32> to vector<1x8x8xf32>
    %21 = vector.shape_cast %13 : vector<8x8xf32> to vector<1x8x8xf32>
    %22 = vector.shape_cast %14 : vector<8x8xf32> to vector<1x8x8xf32>
    %23 = vector.shape_cast %15 : vector<8x8xf32> to vector<1x8x8xf32>
    %24 = vector.shape_cast %16 : vector<8x8xf32> to vector<1x8x8xf32>
    %25 = vector.shape_cast %17 : vector<8x8xf32> to vector<1x8x8xf32>
    %26 = vector.shape_cast %18 : vector<8x8xf32> to vector<1x8x8xf32>
    %27 = tpu.concatenate %19, %20, %21, %22, %23, %24, %25, %26 in 0 : vector<1x8x8xf32>, vector<1x8x8xf32>, vector<1x8x8xf32>, vector<1x8x8xf32>, vector<1x8x8xf32>, vector<1x8x8xf32>, vector<1x8x8xf32>, vector<1x8x8xf32> -> vector<8x8x8xf32>
    %28 = vector.extract_strided_slice %9 {offsets = [0, 0], sizes = [8, 8], strides = [1, 1]} : vector<16x32xf32> to vector<8x8xf32>
    %29 = vector.extract_strided_slice %9 {offsets = [0, 8], sizes = [8, 8], strides = [1, 1]} : vector<16x32xf32> to vector<8x8xf32>
    %30 = vector.extract_strided_slice %9 {offsets = [0, 16], sizes = [8, 8], strides = [1, 1]} : vector<16x32xf32> to vector<8x8xf32>
    %31 = vector.extract_strided_slice %9 {offsets = [0, 24], sizes = [8, 8], strides = [1, 1]} : vector<16x32xf32> to vector<8x8xf32>
    %32 = vector.extract_strided_slice %9 {offsets = [8, 0], sizes = [8, 8], strides = [1, 1]} : vector<16x32xf32> to vector<8x8xf32>
    %33 = vector.extract_strided_slice %9 {offsets = [8, 8], sizes = [8, 8], strides = [1, 1]} : vector<16x32xf32> to vector<8x8xf32>
    %34 = vector.extract_strided_slice %9 {offsets = [8, 16], sizes = [8, 8], strides = [1, 1]} : vector<16x32xf32> to vector<8x8xf32>
    %35 = vector.extract_strided_slice %9 {offsets = [8, 24], sizes = [8, 8], strides = [1, 1]} : vector<16x32xf32> to vector<8x8xf32>
    %36 = vector.shape_cast %28 : vector<8x8xf32> to vector<1x8x8xf32>
    %37 = vector.shape_cast %29 : vector<8x8xf32> to vector<1x8x8xf32>
    %38 = vector.shape_cast %30 : vector<8x8xf32> to vector<1x8x8xf32>
    %39 = vector.shape_cast %31 : vector<8x8xf32> to vector<1x8x8xf32>
    %40 = vector.shape_cast %32 : vector<8x8xf32> to vector<1x8x8xf32>
    %41 = vector.shape_cast %33 : vector<8x8xf32> to vector<1x8x8xf32>
    %42 = vector.shape_cast %34 : vector<8x8xf32> to vector<1x8x8xf32>
    %43 = vector.shape_cast %35 : vector<8x8xf32> to vector<1x8x8xf32>
    %44 = tpu.concatenate %36, %37, %38, %39, %40, %41, %42, %43 in 0 : vector<1x8x8xf32>, vector<1x8x8xf32>, vector<1x8x8xf32>, vector<1x8x8xf32>, vector<1x8x8xf32>, vector<1x8x8xf32>, vector<1x8x8xf32>, vector<1x8x8xf32> -> vector<8x8x8xf32>
    %45 = vector.extract_strided_slice %10 {offsets = [0, 0], sizes = [8, 8], strides = [1, 1]} : vector<16x32xf32> to vector<8x8xf32>
    %46 = vector.extract_strided_slice %10 {offsets = [0, 8], sizes = [8, 8], strides = [1, 1]} : vector<16x32xf32> to vector<8x8xf32>
    %47 = vector.extract_strided_slice %10 {offsets = [0, 16], sizes = [8, 8], strides = [1, 1]} : vector<16x32xf32> to vector<8x8xf32>
    %48 = vector.extract_strided_slice %10 {offsets = [0, 24], sizes = [8, 8], strides = [1, 1]} : vector<16x32xf32> to vector<8x8xf32>
    %49 = vector.extract_strided_slice %10 {offsets = [8, 0], sizes = [8, 8], strides = [1, 1]} : vector<16x32xf32> to vector<8x8xf32>
    %50 = vector.extract_strided_slice %10 {offsets = [8, 8], sizes = [8, 8], strides = [1, 1]} : vector<16x32xf32> to vector<8x8xf32>
    %51 = vector.extract_strided_slice %10 {offsets = [8, 16], sizes = [8, 8], strides = [1, 1]} : vector<16x32xf32> to vector<8x8xf32>
    %52 = vector.extract_strided_slice %10 {offsets = [8, 24], sizes = [8, 8], strides = [1, 1]} : vector<16x32xf32> to vector<8x8xf32>
    %53 = vector.shape_cast %45 : vector<8x8xf32> to vector<1x8x8xf32>
    %54 = vector.shape_cast %46 : vector<8x8xf32> to vector<1x8x8xf32>
    %55 = vector.shape_cast %47 : vector<8x8xf32> to vector<1x8x8xf32>
    %56 = vector.shape_cast %48 : vector<8x8xf32> to vector<1x8x8xf32>
    %57 = vector.shape_cast %49 : vector<8x8xf32> to vector<1x8x8xf32>
    %58 = vector.shape_cast %50 : vector<8x8xf32> to vector<1x8x8xf32>
    %59 = vector.shape_cast %51 : vector<8x8xf32> to vector<1x8x8xf32>
    %60 = vector.shape_cast %52 : vector<8x8xf32> to vector<1x8x8xf32>
    %61 = tpu.concatenate %53, %54, %55, %56, %57, %58, %59, %60 in 0 : vector<1x8x8xf32>, vector<1x8x8xf32>, vector<1x8x8xf32>, vector<1x8x8xf32>, vector<1x8x8xf32>, vector<1x8x8xf32>, vector<1x8x8xf32>, vector<1x8x8xf32> -> vector<8x8x8xf32>
    "tpu.trace_start"() <{level = 10 : i32, message = "nqd,nkd->nqk"}> : () -> ()
    %cst_5 = arith.constant dense<0.000000e+00> : vector<8x8x8xf32>
    %62 = tpu.matmul %27, %44, %cst_5 {dimension_numbers = #tpu.dot_dimension_numbers<[2], [2], [1], [1], [0, 0, 0, 1, 1, 1], [0], [0]>} : vector<8x8x8xf32>, vector<8x8x8xf32>, vector<8x8x8xf32> -> vector<8x8x8xf32>
    "tpu.trace_stop"() : () -> ()
    %cst_6 = arith.constant 0.353553385 : f32
    %63 = vector.broadcast %cst_6 : f32 to vector<8x8x8xf32>
    %64 = arith.mulf %62, %63 : vector<8x8x8xf32>
    %c0_7 = arith.constant 0 : index
    %c0_8 = arith.constant 0 : index
    %c0_9 = arith.constant 0 : index
    %65 = vector.load %arg1[%c0_7, %c0_8, %c0_9] : memref<8x8x8xf32, #tpu.memory_space<vmem>>, vector<8x8x8xf32>
    %66 = arith.addf %64, %65 : vector<8x8x8xf32>
    %cst_10 = arith.constant dense<0xFF800000> : vector<8x8xf32>
    %67 = vector.multi_reduction <maximumf>, %66, %cst_10 [2] : vector<8x8x8xf32> to vector<8x8xf32>
    %68 = vector.shape_cast %67 : vector<8x8xf32> to vector<8x8x1xf32>
    %69 = vector.broadcast %68 : vector<8x8x1xf32> to vector<8x8x8xf32>
    %70 = arith.subf %66, %69 : vector<8x8x8xf32>
    %71 = math.exp %70 : vector<8x8x8xf32>
    %cst_11 = arith.constant dense<0.000000e+00> : vector<8x8xf32>
    %72 = vector.multi_reduction <add>, %71, %cst_11 [2] : vector<8x8x8xf32> to vector<8x8xf32>
    %73 = vector.shape_cast %72 : vector<8x8xf32> to vector<8x8x1xf32>
    %74 = tpu.reciprocal %73 : vector<8x8x1xf32> -> vector<8x8x1xf32>
    %75 = vector.broadcast %74 : vector<8x8x1xf32> to vector<8x8x8xf32>
    %76 = arith.mulf %71, %75 : vector<8x8x8xf32>
    "tpu.trace_start"() <{level = 10 : i32, message = "nqk,nkd->nqd"}> : () -> ()
    %cst_12 = arith.constant dense<0.000000e+00> : vector<8x8x8xf32>
    %77 = tpu.matmul %76, %61, %cst_12 {dimension_numbers = #tpu.dot_dimension_numbers<[2], [1], [1], [2], [0, 0, 0, 1, 1, 2], [0], [0]>} : vector<8x8x8xf32>, vector<8x8x8xf32>, vector<8x8x8xf32> -> vector<8x8x8xf32>
    "tpu.trace_stop"() : () -> ()
    %78 = vector.extract_strided_slice %77 {offsets = [0, 0, 0], sizes = [1, 8, 8], strides = [1, 1, 1]} : vector<8x8x8xf32> to vector<1x8x8xf32>
    %79 = vector.shape_cast %78 : vector<1x8x8xf32> to vector<8x8xf32>
    %80 = vector.extract_strided_slice %77 {offsets = [1, 0, 0], sizes = [1, 8, 8], strides = [1, 1, 1]} : vector<8x8x8xf32> to vector<1x8x8xf32>
    %81 = vector.shape_cast %80 : vector<1x8x8xf32> to vector<8x8xf32>
    %82 = vector.extract_strided_slice %77 {offsets = [2, 0, 0], sizes = [1, 8, 8], strides = [1, 1, 1]} : vector<8x8x8xf32> to vector<1x8x8xf32>
    %83 = vector.shape_cast %82 : vector<1x8x8xf32> to vector<8x8xf32>
    %84 = vector.extract_strided_slice %77 {offsets = [3, 0, 0], sizes = [1, 8, 8], strides = [1, 1, 1]} : vector<8x8x8xf32> to vector<1x8x8xf32>
    %85 = vector.shape_cast %84 : vector<1x8x8xf32> to vector<8x8xf32>
    %86 = tpu.concatenate %79, %81, %83, %85 in 1 : vector<8x8xf32>, vector<8x8xf32>, vector<8x8xf32>, vector<8x8xf32> -> vector<8x32xf32>
    %87 = vector.extract_strided_slice %77 {offsets = [4, 0, 0], sizes = [1, 8, 8], strides = [1, 1, 1]} : vector<8x8x8xf32> to vector<1x8x8xf32>
    %88 = vector.shape_cast %87 : vector<1x8x8xf32> to vector<8x8xf32>
    %89 = vector.extract_strided_slice %77 {offsets = [5, 0, 0], sizes = [1, 8, 8], strides = [1, 1, 1]} : vector<8x8x8xf32> to vector<1x8x8xf32>
    %90 = vector.shape_cast %89 : vector<1x8x8xf32> to vector<8x8xf32>
    %91 = vector.extract_strided_slice %77 {offsets = [6, 0, 0], sizes = [1, 8, 8], strides = [1, 1, 1]} : vector<8x8x8xf32> to vector<1x8x8xf32>
    %92 = vector.shape_cast %91 : vector<1x8x8xf32> to vector<8x8xf32>
    %93 = vector.extract_strided_slice %77 {offsets = [7, 0, 0], sizes = [1, 8, 8], strides = [1, 1, 1]} : vector<8x8x8xf32> to vector<1x8x8xf32>
    %94 = vector.shape_cast %93 : vector<1x8x8xf32> to vector<8x8xf32>
    %95 = tpu.concatenate %88, %90, %92, %94 in 1 : vector<8x8xf32>, vector<8x8xf32>, vector<8x8xf32>, vector<8x8xf32> -> vector<8x32xf32>
    %96 = tpu.concatenate %86, %95 in 0 : vector<8x32xf32>, vector<8x32xf32> -> vector<16x32xf32>
    %97 = vector.extract_strided_slice %76 {offsets = [0, 0, 0], sizes = [1, 8, 8], strides = [1, 1, 1]} : vector<8x8x8xf32> to vector<1x8x8xf32>
    %98 = vector.shape_cast %97 : vector<1x8x8xf32> to vector<8x8xf32>
    %99 = vector.extract_strided_slice %76 {offsets = [1, 0, 0], sizes = [1, 8, 8], strides = [1, 1, 1]} : vector<8x8x8xf32> to vector<1x8x8xf32>
    %100 = vector.shape_cast %99 : vector<1x8x8xf32> to vector<8x8xf32>
    %101 = vector.extract_strided_slice %76 {offsets = [2, 0, 0], sizes = [1, 8, 8], strides = [1, 1, 1]} : vector<8x8x8xf32> to vector<1x8x8xf32>
    %102 = vector.shape_cast %101 : vector<1x8x8xf32> to vector<8x8xf32>
    %103 = vector.extract_strided_slice %76 {offsets = [3, 0, 0], sizes = [1, 8, 8], strides = [1, 1, 1]} : vector<8x8x8xf32> to vector<1x8x8xf32>
    %104 = vector.shape_cast %103 : vector<1x8x8xf32> to vector<8x8xf32>
    %105 = tpu.concatenate %98, %100, %102, %104 in 1 : vector<8x8xf32>, vector<8x8xf32>, vector<8x8xf32>, vector<8x8xf32> -> vector<8x32xf32>
    %106 = vector.extract_strided_slice %76 {offsets = [4, 0, 0], sizes = [1, 8, 8], strides = [1, 1, 1]} : vector<8x8x8xf32> to vector<1x8x8xf32>
    %107 = vector.shape_cast %106 : vector<1x8x8xf32> to vector<8x8xf32>
    %108 = vector.extract_strided_slice %76 {offsets = [5, 0, 0], sizes = [1, 8, 8], strides = [1, 1, 1]} : vector<8x8x8xf32> to vector<1x8x8xf32>
    %109 = vector.shape_cast %108 : vector<1x8x8xf32> to vector<8x8xf32>
    %110 = vector.extract_strided_slice %76 {offsets = [6, 0, 0], sizes = [1, 8, 8], strides = [1, 1, 1]} : vector<8x8x8xf32> to vector<1x8x8xf32>
    %111 = vector.shape_cast %110 : vector<1x8x8xf32> to vector<8x8xf32>
    %112 = vector.extract_strided_slice %76 {offsets = [7, 0, 0], sizes = [1, 8, 8], strides = [1, 1, 1]} : vector<8x8x8xf32> to vector<1x8x8xf32>
    %113 = vector.shape_cast %112 : vector<1x8x8xf32> to vector<8x8xf32>
    %114 = tpu.concatenate %107, %109, %111, %113 in 1 : vector<8x8xf32>, vector<8x8xf32>, vector<8x8xf32>, vector<8x8xf32> -> vector<8x32xf32>
    %115 = tpu.concatenate %105, %114 in 0 : vector<8x32xf32>, vector<8x32xf32> -> vector<16x32xf32>
    %c0_13 = arith.constant 0 : index
    %c0_14 = arith.constant 0 : index
    %116 = vector.load %arg9[%c0_13, %c0_14] : memref<16x32xf32, #tpu.memory_space<vmem>>, vector<16x32xf32>
    tpu.vector_store %arg9[%c0_13, %c0_14], %115 {strides = array<i32>} : memref<16x32xf32, #tpu.memory_space<vmem>>, vector<16x32xf32>,
    %c0_15 = arith.constant 0 : index
    %c0_16 = arith.constant 0 : index
    %117 = vector.load %arg4[%c0_15, %c0_16] : memref<32x32xf32, #tpu.memory_space<vmem>>, vector<32x32xf32>
    %cst_17 = arith.constant dense<0.000000e+00> : vector<16x32xf32>
    %118 = tpu.matmul %96, %117, %cst_17 {dimension_numbers = #tpu.dot_dimension_numbers<[1], [0], [0], [1], [0, 0, 1, 1], [], []>} : vector<16x32xf32>, vector<32x32xf32>, vector<16x32xf32> -> vector<16x32xf32>
    %c0_18 = arith.constant 0 : index
    %c0_19 = arith.constant 0 : index
    %119 = vector.load %arg5[%c0_18, %c0_19] : memref<1x32xf32, #tpu.memory_space<vmem>>, vector<1x32xf32>
    %120 = vector.shape_cast %119 : vector<1x32xf32> to vector<32xf32>
    %121 = vector.shape_cast %120 : vector<32xf32> to vector<1x32xf32>
    %122 = vector.broadcast %121 : vector<1x32xf32> to vector<16x32xf32>
    %123 = arith.addf %118, %122 : vector<16x32xf32>
    %124 = vector.extract_strided_slice %0 {offsets = [0, 0], sizes = [16, 32], strides = [1, 1]} : vector<48x32xf32> to vector<16x32xf32>
    %125 = arith.addf %123, %124 : vector<16x32xf32>
    %cst_20 = arith.constant dense<0.000000e+00> : vector<16xf32>
    %126 = vector.multi_reduction <add>, %125, %cst_20 [1] : vector<16x32xf32> to vector<16xf32>
    %127 = vector.shape_cast %126 : vector<16xf32> to vector<16x1xf32>
    %cst_21 = arith.constant 3.200000e+01 : f32
    %128 = vector.broadcast %cst_21 : f32 to vector<16x1xf32>
    %129 = arith.divf %127, %128 : vector<16x1xf32>
    %130 = vector.broadcast %129 : vector<16x1xf32> to vector<16x32xf32>
    %131 = arith.subf %125, %130 : vector<16x32xf32>
    %132 = vector.broadcast %129 : vector<16x1xf32> to vector<16x32xf32>
    %133 = arith.subf %125, %132 : vector<16x32xf32>
    %134 = arith.mulf %131, %133 : vector<16x32xf32>
    %cst_22 = arith.constant dense<0.000000e+00> : vector<16xf32>
    %135 = vector.multi_reduction <add>, %134, %cst_22 [1] : vector<16x32xf32> to vector<16xf32>
    %136 = vector.shape_cast %135 : vector<16xf32> to vector<16x1xf32>
    %cst_23 = arith.constant 3.200000e+01 : f32
    %137 = vector.broadcast %cst_23 : f32 to vector<16x1xf32>
    %138 = arith.divf %136, %137 : vector<16x1xf32>
    %139 = vector.broadcast %129 : vector<16x1xf32> to vector<16x32xf32>
    %140 = arith.subf %125, %139 : vector<16x32xf32>
    %cst_24 = arith.constant 9.99999974E-6 : f32
    %141 = vector.broadcast %cst_24 : f32 to vector<16x1xf32>
    %142 = arith.addf %138, %141 : vector<16x1xf32>
    %143 = math.rsqrt %142 : vector<16x1xf32>
    %144 = vector.broadcast %143 : vector<16x1xf32> to vector<16x32xf32>
    %145 = arith.mulf %140, %144 : vector<16x32xf32>
    %c0_25 = arith.constant 0 : index
    %c0_26 = arith.constant 0 : index
    %146 = vector.load %arg6[%c0_25, %c0_26] : memref<1x32xf32, #tpu.memory_space<vmem>>, vector<1x32xf32>
    %147 = vector.shape_cast %146 : vector<1x32xf32> to vector<32xf32>
    %148 = vector.shape_cast %147 : vector<32xf32> to vector<1x32xf32>
    %149 = vector.broadcast %148 : vector<1x32xf32> to vector<16x32xf32>
    %150 = arith.mulf %145, %149 : vector<16x32xf32>
    %c0_27 = arith.constant 0 : index
    %c0_28 = arith.constant 0 : index
    %151 = vector.load %arg7[%c0_27, %c0_28] : memref<1x32xf32, #tpu.memory_space<vmem>>, vector<1x32xf32>
    %152 = vector.shape_cast %151 : vector<1x32xf32> to vector<32xf32>
    %153 = vector.shape_cast %152 : vector<32xf32> to vector<1x32xf32>
    %154 = vector.broadcast %153 : vector<1x32xf32> to vector<16x32xf32>
    %155 = arith.addf %150, %154 : vector<16x32xf32>
    %c0_29 = arith.constant 0 : index
    %c0_30 = arith.constant 0 : index
    %156 = vector.load %arg8[%c0_29, %c0_30] : memref<16x32xf32, #tpu.memory_space<vmem>>, vector<16x32xf32>
    tpu.vector_store %arg8[%c0_29, %c0_30], %155 {strides = array<i32>} : memref<16x32xf32, #tpu.memory_space<vmem>>, vector<16x32xf32>,
    return
  }
}

</mosaic_0001>

<bundles_post_ra>
// kernel: tpu_custom_call.1
= control target key start
LH: loop header
LB: loop body
LE: loop exit
PB: predicated region body
PF: predicated region fallthrough
CT: control target
= control target key end

     0   :  { %15 = vsyncpa [#allocation3], 0  ;;  %s2580_s0 = inlined_call_operand.vmem [shape: f32[48,32], index: 0, kind: input, shape index: {}]   ;;  %s2581_s1 = inlined_call_operand.vmem [shape: f32[8,8,8], index: 1, kind: input, shape index: {}]   ;;  %s2582_s2 = inlined_call_operand.hbm [shape: f32[32,96], index: 2, kind: input, shape index: {}]   ;;  %s2583_s3 = inlined_call_operand.vmem [shape: f32[1,96], index: 3, kind: input, shape index: {}]   ;;  %s2584_s4 = inlined_call_operand.hbm [shape: f32[32,32], index: 4, kind: input, shape index: {}]   ;;  %s2585_s5 = inlined_call_operand.vmem [shape: f32[1,32], index: 5, kind: input, shape index: {}]   ;;  %s2586_s6 = inlined_call_operand.vmem [shape: f32[1,32], index: 6, kind: input, shape index: {}]   ;;  %s2587_s7 = inlined_call_operand.vmem [shape: f32[1,32], index: 7, kind: input, shape index: {}]   ;;  %s2588_s8 = inlined_call_operand.hbm [shape: f32[16,32], index: 8, kind: output, shape index: {0}]   ;;  %s2589_s9 = inlined_call_operand.hbm [shape: f32[16,32], index: 9, kind: output, shape index: {1}]  }
   0x1   :  { %16 = vsyncpa [#allocation6], 0 }
   0x2   :  { %17 = vsyncpa [#allocation4], 0 }
   0x3   :  { %18 = vsyncpa [#allocation9], 0  ;;  %s2151_s30 = smov [#allocation2]   ;;  %s2055_s13 = scalar_lea.hbm %s2582_s2, 512 }
   0x4   :  { %s28_s10 = sshll.u32 %s2151_s30, 4  ;;  %p2056_p0 = scmp.ne.s32.totalorder %s2582_s2, %s2055_s13  ;;  %s29_s10 = int_to_ptr.vmem [resolvable:$true] %s28_s10 }
   0x5   :  { %p2059_p1 = scmp.lt.u32.totalorder %s2055_s13, %s2582_s2 }
   0x7   :  { %p2061_p2 = pnand %p2059_p1, %p2056_p0 }
   0x9   :  { %2064 = shalt.err (!%p2061_p2)
}
   0xa   :  { %s2065_s18 = scalar_lea.vmem %s29_s10, 512  ;;  %p2070_p4 = scmp.lt.s32.totalorder %s29_s10, %s29_s10 }
   0xb   :  { %p2066_p3 = scmp.ne.s32.totalorder %s29_s10, %s2065_s18  ;;  %p2071_p5 = scmp.lt.s32.totalorder %s2065_s18, %s2065_s18 }
   0xd   :  { %p2072_p6 = por %p2071_p5, %p2070_p4 }
   0xf   :  { %p2073_p7 = pnand %p2072_p6, %p2066_p3 }
  0x11   :  { %2076 = shalt.err (!%p2073_p7)
}
  0x12   :  { %s2152_s19 = smov 128   ;;  %s2153_s20 = smov 8  }
  0x13   :  { %34 = dma.hbm_to_vmem [thread:$0]  %s2582_s2, 512, %s29_s10, [#allocation3], %s2152_s19, %s2152_s19, %s2153_s20  }
  0x14   :  { %s2154_s23 = smov [#allocation5]   ;;  %s2077_s27 = scalar_lea.hbm %s2584_s4, 512 }
  0x15   :  { %s42_s24 = sshll.u32 %s2154_s23, 4  ;;  %p2078_p8 = scmp.ne.s32.totalorder %s2584_s4, %s2077_s27  ;;  %s43_s24 = int_to_ptr.vmem [resolvable:$true] %s42_s24 }
  0x16   :  { %p2081_p9 = scmp.lt.u32.totalorder %s2077_s27, %s2584_s4 }
  0x18   :  { %p2083_p10 = pnand %p2081_p9, %p2078_p8 }
  0x1a   :  { %2086 = shalt.err (!%p2083_p10)
}
  0x1b   :  { %s2087_s12 = scalar_lea.vmem %s43_s24, 512  ;;  %p2092_p12 = scmp.lt.s32.totalorder %s43_s24, %s43_s24 }
  0x1c   :  { %p2088_p11 = scmp.ne.s32.totalorder %s43_s24, %s2087_s12  ;;  %p2093_p13 = scmp.lt.s32.totalorder %s2087_s12, %s2087_s12 }
  0x1e   :  { %p2094_p0 = por %p2093_p13, %p2092_p12 }
  0x20   :  { %p2095_p1 = pnand %p2094_p0, %p2088_p11 }
  0x22   :  { %2098 = shalt.err (!%p2095_p1)
}
  0x23   :  { %48 = dma.hbm_to_vmem [thread:$0]  %s2584_s4, 512, %s43_s24, [#allocation6], %s2152_s19, %s2152_s19, %s2153_s20  }
  0x24   :  { %2143 = dma.done.wait [#allocation3], 512  }
  0x25   :  { %2144 = vsyncadd [#allocation3], 4294966784 }
  0x26   :  { %2145 = dma.done.wait [#allocation6], 512  }
  0x27   :  { %2146 = vsyncadd [#allocation6], 4294966784  ;;  %vm78_vm0 = vcmask 261120   ;;  %v67_v0 = vld [vmem:[#allocation2] sm:$0xff]  ;;  %v68_v1 = vld [vmem:[#allocation2 + $0x8] sm:$0xff]  ;;  %v2155_v13 = vmov 0.0  }
  0x28   :  { %v69_v2 = vld [vmem:[#allocation2 + $0x10] sm:$0xff]  ;;  %v1988_v3 = vpack.c.bf16 %v68_v1, %v67_v0  ;;  %v70_v4 = vld [vmem:[#allocation2 + $0x18] sm:$0xff]  ;;  %v2249_v5 = vld [vmem:[%s2580_s0] sm:$0xff]  ;;  %1897 = vmatprep.subr.mxu1 %v2155_v13  ;;  %s2156_s24 = smov 104   ;;  %s2157_s25 = smov 120   ;;  %vm2158_vm1 = vmmov 0  }
  0x29   :  { %v1992_v6 = vpack.c.bf16 %v70_v4, %v69_v2  ;;  %1888 = vmatprep.mubr.msk.f32.mxu0 %vm78_vm0, %v2249_v5  ;;  %v2256_v7 = vld [vmem:[%s2580_s0 + $0x8] sm:$0xff]  ;;  %v63_v8 = vld [vmem:[%s2580_s0 + $0x10] sm:$0xff]  ;;  %v64_v9 = vld [vmem:[%s2580_s0 + $0x18] sm:$0xff]  ;;  %1899 = vmatprep.mubr.msk.f32.mxu1 %vm2158_vm1, %v2155_v13  ;;  %s2159_s26 = smov 112   ;;  %vm236_vm2 = vcmask 64512   ;;  %vm1576_vm3 = vcmask 130048  }
  0x2a   :  { %1989 = vmatprep.subr.bf16.mxu0 %v1988_v3  ;;  %v2273_v14 = vld [vmem:[%s2583_s3] ss:$0 sm:$0xff]  ;;  %s2160_s3 = smov 96   ;;  %v66_v20 = vld [vmem:[%s2580_s0 + $0x28] sm:$0xff]  ;;  %v853_v53 = vld [vmem:[%s2581_s1 + $0x10] sm:$0xff]  ;;  %vm1578_vm4 = vcmask 195584  }
  0x2b   :  { %1991 = vmatpush3.bf16.msra.mxu0 %v1988_v3  ;;  %v65_v19 = vld [vmem:[%s2580_s0 + $0x20] sm:$0xff]  ;;  %v854_v58 = vld [vmem:[%s2581_s1 + $0x18] sm:$0xff]  ;;  %v857_v63 = vld [vmem:[%s2581_s1 + $0x30] sm:$0xff] }
  0x2c   :  { %1993 = vmatprep.subr.bf16.mxu0 %v1992_v6  ;;  %v851_v45 = vld [vmem:[%s2581_s1] sm:$0xff] }
  0x2f   :  { %1995 = vmatpush3.bf16.msra.mxu0 %v1992_v6  ;;  %v852_v6 = vld [vmem:[%s2581_s1 + $0x8] sm:$0xff] }
  0x30   :  { %1927 = vmatprep.subr.mxu0 %v2155_v13 }
  0x32   :  { %1889 = vmatmul.mubr.msk.f32.vlgmr.msra.gmra.mrb[0].mxu0 %vm78_vm0, %v2256_v7 }
  0x33   :  { %1891 = vmatprep.mubr.msk.f32.mxu0 %vm78_vm0, %v63_v8 }
  0x36   :  { %1892 = vmatmul.mubr.msk.f32.gmra.mrb[2].mxu0 %vm78_vm0, %v64_v9 }
  0x37   :  { %1894 = vmatprep.mubr.msk.f32.mxu0 %vm78_vm0, %v65_v19 }
  0x3a   :  { %1895 = vmatmul.mubr.msk.f32.gmra.mrb[4].mxu0 %vm78_vm0, %v66_v20 }
  0x3b   :  { %1929 = vmatprep.mubr.msk.f32.mxu0 %vm2158_vm1, %v2155_v13 }
 0x105   :  { %v1890_v10 = vpop.f32.mrb[0].mxu0 }
 0x106   :  { %v163_v11 = vpop.f32.mrb[1].mxu0  ;;  %v169_v26 = vadd.f32 %v1890_v10, %v2273_v14 }
 0x107   :  { %v164_v18 = vadd.f32 %v2273_v14, %v163_v11 }
 0x109   :  { %v1893_v12 = vpop.f32.mrb[2].mxu0 }
 0x10a   :  { %v173_v15 = vpop.f32.mrb[3].mxu0  ;;  %v179_v17 = vadd.f32 %v1893_v12, %v2273_v14 }
 0x10b   :  { %v174_v16 = vadd.f32 %v2273_v14, %v173_v15 }
 0x10d   :  { %211 = vrot.lane.b32.xlu1 %v174_v16, %s2156_s24  ;;  %207 = vrot.lane.b32.xlu0 %v174_v16, %s2157_s25  ;;  %v1896_v42 = vpop.f32.mrb[4].mxu0 }
 0x10e   :  { %v183_v43 = vpop.f32.mrb[5].mxu0 }
 0x111   :  { %214 = vrot.lane.b32.xlu1 %v179_v17, %s2157_s25  ;;  %209 = vrot.lane.b32.xlu0 %v174_v16, %s2159_s26 }
 0x115   :  { %218 = vrot.lane.b32.xlu1 %v179_v17, %s2156_s24  ;;  %216 = vrot.lane.b32.xlu0 %v179_v17, %s2159_s26 }
 0x119   :  { %234 = vrot.lane.b32.xlu0 %v174_v16, %s2160_s3 }
 0x11d   :  { %193 = vrot.lane.b32.xlu0 %v164_v18, %s2157_s25 }
 0x121   :  { %195 = vrot.lane.b32.xlu0 %v164_v18, %s2159_s26 }
 0x125   :  { %197 = vrot.lane.b32.xlu0 %v164_v18, %s2156_s24 }
 0x17f   :  { %v212_v21 = vpop.permute.xlu1 %211  ;;  %v208_v22 = vpop.permute.xlu0 %207 }
 0x180   :  { %311 = vrot.lane.b32.xlu1 %v208_v22, %s2160_s3 }
 0x183   :  { %v215_v23 = vpop.permute.xlu1 %214  ;;  %v210_v24 = vpop.permute.xlu0 %209 }
 0x184   :  { %387 = vrot.lane.b32.xlu1 %v210_v24, %s2160_s3  ;;  %615 = vrot.lane.b32.xlu0 %v215_v23, %s2160_s3 }
 0x187   :  { %v217_v25 = vpop.permute.xlu0 %216  ;;  %v219_v28 = vpop.permute.xlu1 %218 }
 0x188   :  { %463 = vrot.lane.b32.xlu1 %v212_v21, %s2160_s3  ;;  %691 = vrot.lane.b32.xlu0 %v217_v25, %s2160_s3 }
 0x18b   :  { %v235_v27 = vpop.permute.xlu0 %234 }
 0x18c   :  { %539 = vrot.lane.b32.xlu1 %v179_v17, %s2160_s3  ;;  %1898 = vmatpush3.xpose.msk.msra.mxu1 %vm236_vm2, %v235_v27  ;;  %v856_v17 = vld [vmem:[%s2581_s1 + $0x28] sm:$0xff] }
 0x18d   :  { %202 = vrot.lane.b32.xlu0 %v169_v26, %s2159_s26  ;;  %1902 = vmatprep.subr.mxu1 %v2155_v13 }
 0x18f   :  { %1900 = vmatmul.mubr.msk.f32.vlgmr.msra.gmra.mrb[0].mxu1 %vm236_vm2, %v164_v18  ;;  %v194_v29 = vpop.permute.xlu0 %193  ;;  %v855_v18 = vld [vmem:[%s2581_s1 + $0x20] sm:$0xff] }
 0x190   :  { %200 = vrot.lane.b32.xlu1 %v169_v26, %s2157_s25  ;;  %1904 = vmatprep.mubr.msk.f32.mxu1 %vm2158_vm1, %v2155_v13 }
 0x193   :  { %v196_v30 = vpop.permute.xlu0 %195 }
 0x194   :  { %767 = vrot.lane.b32.xlu1 %v219_v28, %s2160_s3 }
 0x197   :  { %v198_v31 = vpop.permute.xlu0 %197 }
 0x198   :  { %204 = vrot.lane.b32.xlu1 %v169_v26, %s2156_s24 }
 0x1f2   :  { %v312_v32 = vpop.permute.xlu1 %311 }
 0x1f3   :  { %1903 = vmatpush3.xpose.msk.msra.mxu1 %vm236_vm2, %v312_v32  ;;  %v184_v32 = vadd.f32 %v2273_v14, %v183_v43 }
 0x1f4   :  { %1907 = vmatprep.subr.mxu1 %v2155_v13 }
 0x1f6   :  { %v388_v33 = vpop.permute.xlu1 %387  ;;  %v616_v34 = vpop.permute.xlu0 %615  ;;  %1905 = vmatmul.mubr.msk.f32.vlgmr.msra.gmra.mrb[2].mxu1 %vm236_vm2, %v194_v29 }
 0x1f7   :  { %1908 = vmatpush3.xpose.msk.msra.mxu1 %vm236_vm2, %v388_v33  ;;  %1909 = vmatprep.mubr.msk.f32.mxu1 %vm2158_vm1, %v2155_v13  ;;  %v189_v33 = vadd.f32 %v1896_v42, %v2273_v14 }
 0x1f8   :  { %1912 = vmatprep.subr.mxu1 %v2155_v13 }
 0x1fa   :  { %v464_v35 = vpop.permute.xlu1 %463  ;;  %v692_v36 = vpop.permute.xlu0 %691  ;;  %1910 = vmatmul.mubr.msk.f32.vlgmr.msra.gmra.mrb[4].mxu1 %vm236_vm2, %v196_v30 }
 0x1fb   :  { %1913 = vmatpush3.xpose.msk.msra.mxu1 %vm236_vm2, %v464_v35  ;;  %1928 = vmatpush3.xpose.msk.msra.mxu0 %vm236_vm2, %v692_v36 }
 0x1fc   :  { %1914 = vmatprep.mubr.msk.f32.mxu1 %vm2158_vm1, %v2155_v13  ;;  %1917 = vmatprep.subr.mxu1 %v2155_v13 }
 0x1fd   :  { %1937 = vmatprep.subr.mxu0 %v2155_v13 }
 0x1fe   :  { %v540_v37 = vpop.permute.xlu1 %539  ;;  %1915 = vmatmul.mubr.msk.f32.vlgmr.msra.gmra.mrb[6].mxu1 %vm236_vm2, %v198_v31 }
 0x1ff   :  { %v203_v38 = vpop.permute.xlu0 %202  ;;  %1918 = vmatpush3.xpose.msk.msra.mxu1 %vm236_vm2, %v540_v37  ;;  %1919 = vmatprep.mubr.msk.f32.mxu1 %vm2158_vm1, %v2155_v13 }
 0x200   :  { %1930 = vmatmul.mubr.msk.f32.vlgmr.msra.gmra.mrb[6].mxu0 %vm236_vm2, %v203_v38  ;;  %1922 = vmatprep.subr.mxu1 %v2155_v13 }
 0x201   :  { %1939 = vmatprep.mubr.msk.f32.mxu0 %vm2158_vm1, %v2155_v13 }
 0x202   :  { %v201_v39 = vpop.permute.xlu1 %200  ;;  %1920 = vmatmul.mubr.msk.f32.vlgmr.msra.gmra.mrb[8].mxu1 %vm236_vm2, %v169_v26  ;;  %v858_v26 = vld [vmem:[%s2581_s1 + $0x38] sm:$0xff]  ;;  %s2161_s1 = smov 64  }
 0x203   :  { %1923 = vmatpush3.xpose.msk.msra.mxu1 %vm236_vm2, %v616_v34  ;;  %1924 = vmatprep.mubr.msk.f32.mxu1 %vm2158_vm1, %v2155_v13 }
 0x204   :  { %1932 = vmatprep.subr.mxu1 %v2155_v13 }
 0x206   :  { %v768_v40 = vpop.permute.xlu1 %767  ;;  %1925 = vmatmul.mubr.msk.f32.vlgmr.msra.gmra.mrb[10].mxu1 %vm236_vm2, %v201_v39 }
 0x207   :  { %1933 = vmatpush3.xpose.msk.msra.mxu1 %vm236_vm2, %v768_v40  ;;  %1934 = vmatprep.mubr.msk.f32.mxu1 %vm2158_vm1, %v2155_v13 }
 0x208   :  { %1942 = vmatprep.subr.mxu1 %v2155_v13 }
 0x20a   :  { %v205_v41 = vpop.permute.xlu1 %204 }
 0x20b   :  { %1935 = vmatmul.mubr.msk.f32.vlgmr.msra.gmra.mrb[12].mxu1 %vm236_vm2, %v205_v41 }
 0x20c   :  { %1944 = vmatprep.mubr.msk.f32.mxu1 %vm2158_vm1, %v2155_v13 }
 0x262   :  { %v307_v44 = vpop.f32.mrb[0].mxu1 }
 0x263   :  { %v843_v46 = vmul.f32 0.35355338, %v307_v44  ;;  %v1901_v47 = vpop.f32.mrb[1].mxu1 }
 0x265   :  { %v2354_v48 = vadd.f32 %v851_v45, %v843_v46 }
 0x267   :  { %v867_v49 = vsel %vm236_vm2, %v2354_v48, -inf }
 0x268   :  { %868 = vmax.xlane.f32.xlu0 %v867_v49 }
 0x2c9   :  { %v383_v50 = vpop.f32.mrb[2].mxu1 }
 0x2ca   :  { %v1906_v51 = vpop.f32.mrb[3].mxu1  ;;  %v844_v0 = vmul.f32 0.35355338, %v383_v50 }
 0x2cc   :  { %v2382_v15 = vadd.f32 %v852_v6, %v844_v0 }
 0x2cd   :  { %v459_v52 = vpop.f32.mrb[4].mxu1 }
 0x2ce   :  { %v845_v54 = vmul.f32 0.35355338, %v459_v52  ;;  %v1911_v55 = vpop.f32.mrb[5].mxu1  ;;  %v870_v21 = vsel %vm236_vm2, %v2382_v15, -inf }
 0x2d0   :  { %v2361_v56 = vadd.f32 %v853_v53, %v845_v54 }
 0x2d1   :  { %v535_v57 = vpop.f32.mrb[6].mxu1 }
 0x2d2   :  { %v846_v59 = vmul.f32 0.35355338, %v535_v57  ;;  %v1916_v60 = vpop.f32.mrb[7].mxu1  ;;  %v873_v61 = vsel %vm236_vm2, %v2361_v56, -inf }
 0x2d3   :  { %v763_v62 = vpop.f32.mrb[6].mxu0  ;;  %874 = vmax.xlane.f32.xlu0 %v873_v61 }
 0x2d4   :  { %v849_v1 = vmul.f32 0.35355338, %v763_v62  ;;  %v1931_v2 = vpop.f32.mrb[7].mxu0  ;;  %v2371_v3 = vadd.f32 %v854_v58, %v846_v59 }
 0x2d5   :  { %v611_v4 = vpop.f32.mrb[8].mxu1 }
 0x2d6   :  { %v1921_v8 = vpop.f32.mrb[9].mxu1  ;;  %v876_v9 = vsel %vm236_vm2, %v2371_v3, -inf  ;;  %v2378_v10 = vadd.f32 %v857_v63, %v849_v1  ;;  %v847_v11 = vmul.f32 0.35355338, %v611_v4 }
 0x2d7   :  { %877 = vmax.xlane.f32.xlu0 %v876_v9 }
 0x2d8   :  { %v885_v12 = vsel %vm236_vm2, %v2378_v10, -inf  ;;  %v2392_v23 = vadd.f32 %v855_v18, %v847_v11 }
 0x2d9   :  { %886 = vmax.xlane.f32.xlu1 %v885_v12  ;;  %v687_v16 = vpop.f32.mrb[10].mxu1 }
 0x2da   :  { %v848_v19 = vmul.f32 0.35355338, %v687_v16  ;;  %v1926_v20 = vpop.f32.mrb[11].mxu1  ;;  %v879_v29 = vsel %vm236_vm2, %v2392_v23, -inf }
 0x2dc   :  { %v864_v22 = vadd.f32 %v856_v17, %v848_v19 }
 0x2dd   :  { %871 = vmax.xlane.f32.xlu1 %v870_v21 }
 0x2de   :  { %v839_v24 = vpop.f32.mrb[12].mxu1  ;;  %v882_v25 = vsel %vm236_vm2, %v864_v22, -inf }
 0x2df   :  { %v850_v27 = vmul.f32 0.35355338, %v839_v24  ;;  %883 = vmax.xlane.f32.xlu0 %v882_v25  ;;  %v1936_v28 = vpop.f32.mrb[13].mxu1 }
 0x2e1   :  { %880 = vmax.xlane.f32.xlu1 %v879_v29  ;;  %v866_v30 = vadd.f32 %v858_v26, %v850_v27 }
 0x2e3   :  { %v888_v31 = vsel %vm236_vm2, %v866_v30, -inf }
 0x2e4   :  { %889 = vmax.xlane.f32.xlu0 %v888_v31 }
 0x2f2   :  { %221 = vrot.lane.b32.xlu1 %v184_v32, %s2157_s25 }
 0x2f5   :  { %v869_v34 = vpop.xlane.xlu0 %868 }
 0x2f6   :  { %225 = vrot.lane.b32.xlu1 %v184_v32, %s2156_s24  ;;  %v891_v46 = vsub.f32 %v2354_v48, %v869_v34 }
 0x2f8   :  { %v899_v49 = vmul.f32 1.442695, %v891_v46 }
 0x2fa   :  { %228 = vrot.lane.b32.xlu1 %v189_v33, %s2157_s25  ;;  %223 = vrot.lane.b32.xlu0 %v184_v32, %s2159_s26  ;;  %2019 = vpow2.f32 %v899_v49  ;;  %s2163_s25 = smov 24  }
 0x2fe   :  { %232 = vrot.lane.b32.xlu1 %v189_v33, %s2156_s24  ;;  %230 = vrot.lane.b32.xlu0 %v189_v33, %s2159_s26  ;;  %s2162_s24 = smov 16  }
 0x302   :  { %955 = vrot.lane.b32.xlu1 %v184_v32, %s2161_s1 }
 0x304   :  { %v2020_v60 = vpop.eup %2019 }
 0x305   :  { %v915_v63 = vsel %vm236_vm2, %v2020_v60, 0.0 }
 0x360   :  { %v875_v35 = vpop.xlane.xlu0 %874 }
 0x361   :  { %v893_v50 = vsub.f32 %v2361_v56, %v875_v35 }
 0x363   :  { %v903_v51 = vmul.f32 1.442695, %v893_v50 }
 0x364   :  { %v878_v37 = vpop.xlane.xlu0 %877 }
 0x365   :  { %v894_v52 = vsub.f32 %v2371_v3, %v878_v37  ;;  %2021 = vpow2.f32 %v903_v51 }
 0x366   :  { %v887_v36 = vpop.xlane.xlu1 %886 }
 0x367   :  { %v897_v53 = vsub.f32 %v2378_v10, %v887_v36  ;;  %v905_v54 = vmul.f32 1.442695, %v894_v52 }
 0x369   :  { %v911_v57 = vmul.f32 1.442695, %v897_v53  ;;  %2023 = vpow2.f32 %v905_v54 }
 0x36a   :  { %v872_v38 = vpop.xlane.xlu1 %871 }
 0x36b   :  { %v892_v58 = vsub.f32 %v2382_v15, %v872_v38  ;;  %2025 = vpow2.f32 %v911_v57  ;;  %v1622_v57 = vld [vmem:[#allocation5 + $0x8] sm:$0xff] }
 0x36c   :  { %v884_v39 = vpop.xlane.xlu0 %883 }
 0x36d   :  { %v896_v55 = vsub.f32 %v864_v22, %v884_v39  ;;  %v901_v56 = vmul.f32 1.442695, %v892_v58 }
 0x36e   :  { %v881_v40 = vpop.xlane.xlu1 %880 }
 0x36f   :  { %v909_v48 = vmul.f32 1.442695, %v896_v55  ;;  %v895_v61 = vsub.f32 %v2392_v23, %v881_v40  ;;  %v2022_v0 = vpop.eup %2021  ;;  %v1621_v55 = vld [vmem:[#allocation5] sm:$0xff] }
 0x370   :  { %v921_v2 = vsel %vm236_vm2, %v2022_v0, 0.0  ;;  %v1996_v58 = vpack.c.bf16 %v1622_v57, %v1621_v55 }
 0x371   :  { %v890_v41 = vpop.xlane.xlu0 %889  ;;  %2027 = vpow2.f32 %v909_v48  ;;  %v907_v1 = vmul.f32 1.442695, %v895_v61  ;;  %v1623_v48 = vld [vmem:[#allocation5 + $0x10] sm:$0xff] }
 0x372   :  { %v222_v14 = vpop.permute.xlu1 %221  ;;  %v898_v59 = vsub.f32 %v866_v30, %v890_v41  ;;  %2029 = vpow2.f32 %v901_v56 }
 0x373   :  { %1031 = vrot.lane.b32.xlu0 %v222_v14, %s2161_s1  ;;  %v2424_v3 = vpop.eup %2023 }
 0x374   :  { %v913_v62 = vmul.f32 1.442695, %v898_v59  ;;  %v924_v6 = vsel %vm236_vm2, %v2424_v3, 0.0 }
 0x375   :  { %v224_v42 = vpop.permute.xlu0 %223  ;;  %v2426_v4 = vpop.eup %2025 }
 0x376   :  { %v226_v43 = vpop.permute.xlu1 %225  ;;  %1107 = vrot.lane.b32.xlu1 %v224_v42, %s2161_s1  ;;  %2031 = vpow2.f32 %v913_v62  ;;  %v933_v11 = vsel %vm236_vm2, %v2426_v4, 0.0 }
 0x377   :  { %1259 = vrot.lane.b32.xlu0 %v189_v33, %s2161_s1  ;;  %2033 = vpow2.f32 %v907_v1 }
 0x379   :  { %v231_v19 = vpop.permute.xlu0 %230 }
 0x37a   :  { %v229_v44 = vpop.permute.xlu1 %228  ;;  %1183 = vrot.lane.b32.xlu1 %v226_v43, %s2161_s1 }
 0x37b   :  { %v2430_v8 = vpop.eup %2027 }
 0x37c   :  { %v2030_v9 = vpop.eup %2029  ;;  %v930_v10 = vsel %vm236_vm2, %v2430_v8, 0.0 }
 0x37d   :  { %v918_v16 = vsel %vm236_vm2, %v2030_v9, 0.0 }
 0x37e   :  { %v233_v45 = vpop.permute.xlu1 %232  ;;  %1335 = vrot.lane.b32.xlu1 %v229_v44, %s2161_s1 }
 0x380   :  { %v2436_v12 = vpop.eup %2031 }
 0x381   :  { %v936_v15 = vsel %vm236_vm2, %v2436_v12, 0.0  ;;  %v2034_v17 = vpop.eup %2033 }
 0x382   :  { %v956_v47 = vpop.permute.xlu1 %955  ;;  %v927_v18 = vsel %vm236_vm2, %v2034_v17, 0.0 }
 0x383   :  { %1938 = vmatpush3.msra.mxu0 %v956_v47 }
 0x384   :  { %1947 = vmatprep.subr.mxu0 %v2155_v13 }
 0x396   :  { %916 = vadd.xlane.f32.xlu0 %v915_v63 }
 0x39a   :  { %922 = vadd.xlane.f32.xlu0 %v921_v2 }
 0x39e   :  { %925 = vadd.xlane.f32.xlu0 %v924_v6 }
 0x3a2   :  { %931 = vadd.xlane.f32.xlu0 %v930_v10  ;;  %934 = vadd.xlane.f32.xlu1 %v933_v11 }
 0x3a6   :  { %937 = vadd.xlane.f32.xlu0 %v936_v15  ;;  %919 = vadd.xlane.f32.xlu1 %v918_v16 }
 0x3aa   :  { %928 = vadd.xlane.f32.xlu1 %v927_v18 }
 0x3bb   :  { %1487 = vrot.lane.b32.xlu1 %v233_v45, %s2161_s1 }
 0x3bc   :  { %1411 = vrot.lane.b32.xlu0 %v231_v19, %s2161_s1 }
 0x3e5   :  { %v1032_v20 = vpop.permute.xlu0 %1031 }
 0x3e6   :  { %1943 = vmatpush3.msra.mxu1 %v1032_v20 }
 0x3e7   :  { %1952 = vmatprep.subr.mxu1 %v2155_v13 }
 0x3e8   :  { %v1108_v21 = vpop.permute.xlu1 %1107 }
 0x3e9   :  { %v1260_v22 = vpop.permute.xlu0 %1259 }
 0x3ec   :  { %v1184_v24 = vpop.permute.xlu1 %1183 }
 0x3f0   :  { %v1336_v26 = vpop.permute.xlu1 %1335 }
 0x423   :  { %v917_v23 = vpop.xlane.xlu0 %916 }
 0x424   :  { %2035 = vrcp.f32 %v917_v23  ;;  %v1827_v23 = vld [vmem:[%s2585_s5] ss:$0 sm:$0xff]  ;;  %s2164_s5 = smov [#allocation8]  }
 0x425   :  { %s1779_s28 = sshll.u32 %s2164_s5, 4  ;;  %s1780_s28 = int_to_ptr.vmem [resolvable:$true] %s1779_s28 }
 0x426   :  { %s2099_s0 = scalar_lea.vmem %s1780_s28, 256  ;;  %p2104_p3 = scmp.lt.s32.totalorder %s1780_s28, %s1780_s28 }
 0x427   :  { %v923_v25 = vpop.xlane.xlu0 %922  ;;  %p2100_p2 = scmp.ne.s32.totalorder %s1780_s28, %s2099_s0  ;;  %p2105_p4 = scmp.lt.s32.totalorder %s2099_s0, %s2099_s0 }
 0x428   :  { %2037 = vrcp.f32 %v923_v25 }
 0x429   :  { %p2106_p5 = por %p2105_p4, %p2104_p3 }
 0x42b   :  { %v926_v30 = vpop.xlane.xlu0 %925  ;;  %p2107_p6 = pnand %p2106_p5, %p2100_p2 }
 0x42e   :  { %v2036_v27 = vpop.eup %2035 }
 0x42f   :  { %v2445_v28 = vmul.f32 %v2036_v27, %v2020_v60  ;;  %v935_v29 = vpop.xlane.xlu1 %934  ;;  %v932_v34 = vpop.xlane.xlu0 %931 }
 0x431   :  { %1940 = vmatmul.mubr.msk.f32.vlgmr.msra.gmra.mrb[8].mxu0 %vm236_vm2, %v2445_v28 }
 0x432   :  { %v2038_v31 = vpop.eup %2037  ;;  %1948 = vmatpush3.msra.mxu0 %v1108_v21  ;;  %1949 = vmatprep.mubr.msk.f32.mxu0 %vm2158_vm1, %v2155_v13 }
 0x433   :  { %v2451_v32 = vmul.f32 %v2038_v31, %v2022_v0  ;;  %v920_v33 = vpop.xlane.xlu1 %919  ;;  %1957 = vmatprep.subr.mxu0 %v2155_v13  ;;  %v938_v36 = vpop.xlane.xlu0 %937 }
 0x434   :  { %2039 = vrcp.f32 %v920_v33 }
 0x435   :  { %1950 = vmatmul.mubr.msk.f32.vlgmr.msra.gmra.mrb[10].mxu0 %vm236_vm2, %v2451_v32  ;;  %2041 = vrcp.f32 %v926_v30 }
 0x436   :  { %1958 = vmatpush3.msra.mxu0 %v1260_v22  ;;  %1959 = vmatprep.mubr.msk.f32.mxu0 %vm2158_vm1, %v2155_v13 }
 0x437   :  { %v929_v35 = vpop.xlane.xlu1 %928  ;;  %1967 = vmatprep.subr.mxu0 %v2155_v13  ;;  %v1412_v44 = vpop.permute.xlu0 %1411 }
 0x438   :  { %2043 = vrcp.f32 %v929_v35 }
 0x439   :  { %2045 = vrcp.f32 %v935_v29 }
 0x43a   :  { %2047 = vrcp.f32 %v932_v34 }
 0x43b   :  { %2049 = vrcp.f32 %v938_v36  ;;  %v1488_v49 = vpop.permute.xlu1 %1487 }
 0x43e   :  { %v2040_v37 = vpop.eup %2039 }
 0x43f   :  { %v2459_v38 = vmul.f32 %v2040_v37, %v2030_v9  ;;  %v2042_v39 = vpop.eup %2041 }
 0x440   :  { %v2468_v42 = vmul.f32 %v2042_v39, %v2424_v3 }
 0x441   :  { %1945 = vmatmul.mubr.msk.f32.vlgmr.msra.gmra.mrb[14].mxu1 %vm236_vm2, %v2459_v38 }
 0x442   :  { %v2044_v40 = vpop.eup %2043  ;;  %1953 = vmatpush3.msra.mxu1 %v1184_v24  ;;  %1954 = vmatprep.mubr.msk.f32.mxu1 %vm2158_vm1, %v2155_v13 }
 0x443   :  { %v2463_v41 = vmul.f32 %v2044_v40, %v2034_v17  ;;  %v2046_v14 = vpop.eup %2045  ;;  %1962 = vmatprep.subr.mxu1 %v2155_v13 }
 0x444   :  { %v2048_v43 = vpop.eup %2047  ;;  %v2476_v45 = vmul.f32 %v2046_v14, %v2426_v4 }
 0x445   :  { %1960 = vmatmul.mubr.msk.f32.vlgmr.msra.gmra.mrb[12].mxu0 %vm236_vm2, %v2463_v41  ;;  %1955 = vmatmul.mubr.msk.f32.vlgmr.msra.gmra.mrb[16].mxu1 %vm236_vm2, %v2468_v42  ;;  %v2481_v46 = vmul.f32 %v2048_v43, %v2430_v8  ;;  %v2050_v47 = vpop.eup %2049 }
 0x446   :  { %1968 = vmatpush3.msra.mxu0 %v1412_v44  ;;  %1963 = vmatpush3.msra.mxu1 %v1336_v26  ;;  %v2493_v50 = vmul.f32 %v2050_v47, %v2436_v12 }
 0x447   :  { %1964 = vmatprep.mubr.msk.f32.mxu1 %vm2158_vm1, %v2155_v13  ;;  %1969 = vmatprep.mubr.msk.f32.mxu0 %vm2158_vm1, %v2155_v13 }
 0x448   :  { %1972 = vmatprep.subr.mxu1 %v2155_v13  ;;  %1997 = vmatprep.subr.bf16.mxu0 %v1996_v58 }
 0x449   :  { %1970 = vmatmul.mubr.msk.f32.vlgmr.msra.gmra.mrb[14].mxu0 %vm236_vm2, %v2476_v45  ;;  %1965 = vmatmul.mubr.msk.f32.vlgmr.msra.gmra.mrb[18].mxu1 %vm236_vm2, %v2481_v46 }
 0x44a   :  { %1973 = vmatpush3.msra.mxu1 %v1488_v49  ;;  %1974 = vmatprep.mubr.msk.f32.mxu1 %vm2158_vm1, %v2155_v13  ;;  %v1624_v13 = vld [vmem:[#allocation5 + $0x18] sm:$0xff] }
 0x44b   :  { %1999 = vmatpush3.bf16.msra.mxu0 %v1996_v58  ;;  %v2000_v59 = vpack.c.bf16 %v1624_v13, %v1623_v48 }
 0x44d   :  { %1975 = vmatmul.mubr.msk.f32.vlgmr.msra.gmra.mrb[20].mxu1 %vm236_vm2, %v2493_v50  ;;  %2001 = vmatprep.subr.bf16.mxu0 %v2000_v59 }
 0x44f   :  { %2003 = vmatpush3.bf16.msra.mxu0 %v2000_v59 }
 0x504   :  { %v1027_v51 = vpop.f32.mrb[8].mxu0 }
 0x505   :  { %v1941_v52 = vpop.f32.mrb[9].mxu0 }
 0x508   :  { %v1179_v53 = vpop.f32.mrb[10].mxu0 }
 0x509   :  { %1568 = vrot.lane.b32.xlu1 %v1179_v53, %s2162_s24  ;;  %v1951_v54 = vpop.f32.mrb[11].mxu0 }
 0x514   :  { %v1103_v60 = vpop.f32.mrb[14].mxu1 }
 0x515   :  { %1564 = vrot.lane.b32.xlu0 %v1103_v60, %s2153_s20  ;;  %v1946_v56 = vpop.f32.mrb[15].mxu1 }
 0x518   :  { %v1331_v61 = vpop.f32.mrb[12].mxu0  ;;  %v1255_v62 = vpop.f32.mrb[16].mxu1 }
 0x519   :  { %v1961_v63 = vpop.f32.mrb[13].mxu0  ;;  %1572 = vrot.lane.b32.xlu1 %v1255_v62, %s2163_s25  ;;  %v1956_v0 = vpop.f32.mrb[17].mxu1 }
 0x51c   :  { %v1483_v1 = vpop.f32.mrb[14].mxu0  ;;  %v1407_v2 = vpop.f32.mrb[18].mxu1 }
 0x51d   :  { %v1971_v3 = vpop.f32.mrb[15].mxu0  ;;  %1581 = vrot.lane.b32.xlu0 %v1407_v2, %s2153_s20  ;;  %v1966_v4 = vpop.f32.mrb[19].mxu1 }
 0x520   :  { %v1559_v6 = vpop.f32.mrb[20].mxu1 }
 0x521   :  { %1585 = vrot.lane.b32.xlu0 %v1483_v1, %s2162_s24  ;;  %1589 = vrot.lane.b32.xlu1 %v1559_v6, %s2163_s25  ;;  %v1976_v8 = vpop.f32.mrb[21].mxu1 }
 0x57b   :  { %v1569_v9 = vpop.permute.xlu1 %1568 }
 0x587   :  { %v1565_v10 = vpop.permute.xlu0 %1564 }
 0x588   :  { %v1575_v11 = vsel %vm236_vm2, %v1027_v51, %v1565_v10 }
 0x589   :  { %v1577_v12 = vsel %vm1576_vm3, %v1575_v11, %v1569_v9 }
 0x58b   :  { %v1573_v15 = vpop.permute.xlu1 %1572 }
 0x58c   :  { %v1579_v16 = vsel %vm1578_vm4, %v1577_v12, %v1573_v15 }
 0x58d   :  { %1985 = vmatprep.mubr.msk.f32.mxu0 %vm78_vm0, %v1579_v16 }
 0x58f   :  { %v1582_v17 = vpop.permute.xlu0 %1581 }
 0x590   :  { %v1592_v18 = vsel %vm236_vm2, %v1331_v61, %v1582_v17 }
 0x593   :  { %v1586_v19 = vpop.permute.xlu0 %1585  ;;  %v1590_v20 = vpop.permute.xlu1 %1589 }
 0x594   :  { %v1593_v21 = vsel %vm1576_vm3, %v1592_v18, %v1586_v19 }
 0x595   :  { %v1594_v22 = vsel %vm1578_vm4, %v1593_v21, %v1590_v20 }
 0x596   :  { %1986 = vmatmul.mubr.msk.f32.vlgmr.msra.gmra.mrb[16].mxu0 %vm78_vm0, %v1594_v22 }
 0x669   :  { %v1987_v24 = vpop.f32.mrb[16].mxu0 }
 0x66a   :  { %v1710_v25 = vadd.f32 %v1987_v24, %v1827_v23  ;;  %v1704_v26 = vpop.f32.mrb[17].mxu0 }
 0x66b   :  { %v1705_v27 = vadd.f32 %v1827_v23, %v1704_v26 }
 0x66c   :  { %v1714_v29 = vadd.f32 %v1710_v25, %v2256_v7 }
 0x66d   :  { %v1713_v30 = vadd.f32 %v1705_v27, %v2249_v5 }
 0x66e   :  { %v1718_v31 = vsel %vm78_vm0, %v1714_v29, 0.0 }
 0x66f   :  { %1719 = vadd.xlane.f32.xlu1 %v1718_v31  ;;  %v1715_v33 = vsel %vm78_vm0, %v1713_v30, 0.0 }
 0x670   :  { %1716 = vadd.xlane.f32.xlu0 %v1715_v33 }
 0x680   :  { %1595 = vrot.lane.b32.xlu1 %v2459_v38, %s2153_s20 }
 0x684   :  { %1598 = vrot.lane.b32.xlu1 %v2451_v32, %s2162_s24 }
 0x688   :  { %1610 = vrot.lane.b32.xlu1 %v2476_v45, %s2162_s24 }
 0x68c   :  { %1613 = vrot.lane.b32.xlu1 %v2493_v50, %s2163_s25 }
 0x6fc   :  { %v1720_v7 = vpop.xlane.xlu1 %1719 }
 0x6fd   :  { %v1723_v5 = vmul.f32 0.03125, %v1720_v7  ;;  %v1717_v34 = vpop.xlane.xlu0 %1716 }
 0x6fe   :  { %v1722_v35 = vmul.f32 0.03125, %v1717_v34 }
 0x6ff   :  { %v1725_v36 = vsub.f32 %v1714_v29, %v1723_v5 }
 0x700   :  { %v1724_v37 = vsub.f32 %v1713_v30, %v1722_v35  ;;  %v1596_v32 = vpop.permute.xlu1 %1595 }
 0x701   :  { %v1727_v39 = vmul.f32 %v1725_v36, %v1725_v36  ;;  %v1604_v55 = vsel %vm236_vm2, %v2445_v28, %v1596_v32 }
 0x702   :  { %v1726_v14 = vmul.f32 %v1724_v37, %v1724_v37 }
 0x703   :  { %v1731_v40 = vsel %vm78_vm0, %v1727_v39, 0.0 }
 0x704   :  { %1732 = vadd.xlane.f32.xlu0 %v1731_v40  ;;  %v1728_v38 = vsel %vm78_vm0, %v1726_v14, 0.0  ;;  %v1599_v43 = vpop.permute.xlu1 %1598 }
 0x705   :  { %v1605_v58 = vsel %vm1576_vm3, %v1604_v55, %v1599_v43 }
 0x708   :  { %1729 = vadd.xlane.f32.xlu0 %v1728_v38  ;;  %v1611_v49 = vpop.permute.xlu1 %1610 }
 0x71e   :  { %1607 = vrot.lane.b32.xlu0 %v2481_v46, %s2153_s20  ;;  %v1614_v46 = vpop.permute.xlu1 %1613 }
 0x722   :  { %1601 = vrot.lane.b32.xlu0 %v2468_v42, %s2163_s25 }
 0x791   :  { %v1733_v44 = vpop.xlane.xlu0 %1732 }
 0x792   :  { %v1735_v45 = vmul.f32 0.03125, %v1733_v44 }
 0x794   :  { %v1737_v47 = vadd.f32 1e-05, %v1735_v45 }
 0x795   :  { %v1730_v50 = vpop.xlane.xlu0 %1729 }
 0x796   :  { %2051 = vrsqrt.f32 %v1737_v47  ;;  %v1734_v51 = vmul.f32 0.03125, %v1730_v50 }
 0x798   :  { %v1736_v52 = vadd.f32 1e-05, %v1734_v51 }
 0x799   :  { %v1608_v53 = vpop.permute.xlu0 %1607 }
 0x79a   :  { %2053 = vrsqrt.f32 %v1736_v52  ;;  %v1616_v54 = vsel %vm236_vm2, %v2463_v41, %v1608_v53  ;;  %v1830_v41 = vld [vmem:[%s2586_s6] ss:$0 sm:$0xff] }
 0x79b   :  { %v1617_v42 = vsel %vm1576_vm3, %v1616_v54, %v1611_v49 }
 0x79c   :  { %v1618_v57 = vsel %vm1578_vm4, %v1617_v42, %v1614_v46 }
 0x79d   :  { %v1602_v48 = vpop.permute.xlu0 %1601  ;;  %1620 = vst.msk [vmem:[#allocation8 + $0x8] sm:$0xff] %vm78_vm0, %v1618_v57 }
 0x79e   :  { %v1606_v13 = vsel %vm1578_vm4, %v1605_v58, %v1602_v48 }
 0x79f   :  { %1619 = vst.msk [vmem:[#allocation8] sm:$0xff] %vm78_vm0, %v1606_v13 }
 0x7a0   :  { %v2052_v59 = vpop.eup %2051 }
 0x7a1   :  { %2110 = shalt.err (!%p2107_p6)
}
 0x7a2   :  { %s2111_s2 = scalar_lea.hbm %s2589_s9, 256 }
 0x7a3   :  { %p2112_p7 = scmp.ne.s32.totalorder %s2589_s9, %s2111_s2  ;;  %p2115_p8 = scmp.lt.u32.totalorder %s2111_s2, %s2589_s9 }
 0x7a5   :  { %p2117_p9 = pnand %p2115_p8, %p2112_p7 }
 0x7a7   :  { %2120 = shalt.err (!%p2117_p9)
}
 0x7a8   :  { %1785 = dma.vmem_to_hbm [thread:$0]  %s1780_s28, 256, %s2589_s9, [#allocation9], %s2152_s19, %s2152_s19, %s2153_s20   ;;  %v1741_v28 = vmul.f32 %v2052_v59, %v1725_v36  ;;  %v2054_v61 = vpop.eup %2053 }
 0x7a9   :  { %v1831_v60 = vld [vmem:[%s2587_s7] ss:$0 sm:$0xff]  ;;  %v1740_v62 = vmul.f32 %v2054_v61, %v1724_v37  ;;  %s2165_s18 = smov [#allocation7]  }
 0x7aa   :  { %v1750_v56 = vmul.f32 %v1830_v41, %v1741_v28  ;;  %s1767_s21 = sshll.u32 %s2165_s18, 4  ;;  %s1768_s21 = int_to_ptr.vmem [resolvable:$true] %s1767_s21 }
 0x7ab   :  { %v1749_v0 = vmul.f32 %v1830_v41, %v1740_v62  ;;  %s2121_s22 = scalar_lea.vmem %s1768_s21, 256  ;;  %p2126_p11 = scmp.lt.s32.totalorder %s1768_s21, %s1768_s21 }
 0x7ac   :  { %v1759_v63 = vadd.f32 %v1831_v60, %v1750_v56  ;;  %p2122_p10 = scmp.ne.s32.totalorder %s1768_s21, %s2121_s22  ;;  %p2127_p12 = scmp.lt.s32.totalorder %s2121_s22, %s2121_s22 }
 0x7ad   :  { %v1758_v1 = vadd.f32 %v1831_v60, %v1749_v0 }
 0x7ae   :  { %1761 = vst.msk [vmem:[#allocation7 + $0x8] sm:$0xff] %vm78_vm0, %v1759_v63  ;;  %p2128_p13 = por %p2127_p12, %p2126_p11 }
 0x7af   :  { %1760 = vst.msk [vmem:[#allocation7] sm:$0xff] %vm78_vm0, %v1758_v1 }
 0x7b0   :  { %p2129_p0 = pnand %p2128_p13, %p2122_p10 }
 0x7b2   :  { %2132 = shalt.err (!%p2129_p0)
}
 0x7b3   :  { %s2133_s23 = scalar_lea.hbm %s2588_s8, 256 }
 0x7b4   :  { %p2134_p1 = scmp.ne.s32.totalorder %s2588_s8, %s2133_s23  ;;  %p2137_p2 = scmp.lt.u32.totalorder %s2133_s23, %s2588_s8 }
 0x7b6   :  { %p2139_p3 = pnand %p2137_p2, %p2134_p1 }
 0x7b8   :  { %2142 = shalt.err (!%p2139_p3)
}
 0x7b9   :  { %1773 = dma.vmem_to_hbm [thread:$0]  %s1768_s21, 256, %s2588_s8, [#allocation4], %s2152_s19, %s2152_s19, %s2153_s20  }
 0x7ba   :  { %2147 = dma.done.wait [#allocation4], 256  }
 0x7bb   :  { %2148 = vsyncadd [#allocation4], 4294967040 }
 0x7bc   :  { %2149 = dma.done.wait [#allocation9], 256  }
 0x7bd   :  { %2150 = vsyncadd [#allocation9], 4294967040 }
 0x7be   :  { %1792 = vsyncpa [#allocation3], 1 }
 0x7bf   :  { %1793 = vsyncpa [#allocation6], 1 }
 0x7c0   :  { %1794 = vsyncpa [#allocation4], 1 }
 0x7c1   :  { %1795 = vsyncpa [#allocation9], 1 }

</bundles_post_ra>
